<compile_context>
chip_gen: v7x
topology: tpu7x:2x2x1
jax: 0.10.0
libtpu: 0.0.40
codegen_flags: <defaults>
</compile_context>

<pallas_src>
import jax
import jax.numpy as jnp
from jax import lax
from jax.experimental import pallas as pl
from jax.experimental.pallas import tpu as pltpu

TEMPERATURE = 0.1
MASK_FILL = -1000000000.0   # torch masked_fill_ value
EPS = 1e-12                 # torch F.normalize eps


def _make_infonce_kernel(temperature, matmul_dtype):
    inv_sqrt_t = 1.0 / (temperature ** 0.5)   # folded into both operands
    diag_logit = MASK_FILL / temperature      # logits[i, i] after masking
    eps_sq = EPS * EPS                        # clamp sum-of-squares, not norm

    def kernel(q_ref, k_ref, o_ref, m_scr, l_scr):
        i = pl.program_id(0)
        j = pl.program_id(1)

        # init running max / denominator at the first col tile of each row tile
        @pl.when(j == 0)
        def _():
            m_scr[...] = jnp.full_like(m_scr, -jnp.inf)
            l_scr[...] = jnp.zeros_like(l_scr)

        tm = q_ref.shape[0]
        tn = k_ref.shape[0]

        q = q_ref[...].astype(jnp.float32)
        k = k_ref[...].astype(jnp.float32)

        # L2-normalize with EUP rsqrt; fold 1/sqrt(T) into the same scale:
        #   (q_i*inv_i*s) . (q_j*inv_j*s) == (qn_i . qn_j) / T     (s^2 = 1/T)
        q_scale = lax.rsqrt(
            jnp.maximum(jnp.sum(q * q, axis=-1, keepdims=True), eps_sq)) * inv_sqrt_t
        k_scale = lax.rsqrt(
            jnp.maximum(jnp.sum(k * k, axis=-1, keepdims=True), eps_sq)) * inv_sqrt_t
        qn = (q * q_scale).astype(matmul_dtype)
        kn = (k * k_scale).astype(matmul_dtype)

        # logits tile = qn @ kn.T without materializing a transpose (MXU, f32 acc)
        logits = lax.dot_general(
            qn, kn,
            dimension_numbers=(((1,), (1,)), ((), ())),
            preferred_element_type=jnp.float32)

        # mask the global diagonal with the (temperature-scaled) fill value
        row_ids = i * tm + lax.broadcasted_iota(jnp.int32, (tm, tn), 0)
        col_ids = j * tn + lax.broadcasted_iota(jnp.int32, (tm, tn), 1)
        logits = jnp.where(row_ids == col_ids, diag_logit, logits)

        # online logsumexp update (all (tm, 1) keepdims column shapes)
        m_prev = m_scr[...]
        m_new = jnp.maximum(m_prev, jnp.max(logits, axis=-1, keepdims=True))
        alpha = jnp.exp(m_prev - m_new)
        l_scr[...] = alpha * l_scr[...] + jnp.sum(
            jnp.exp(logits - m_new), axis=-1, keepdims=True)
        m_scr[...] = m_new

        # finalize: per-row loss = logsumexp - logits[i, i].  logits[i, i] is
        # the compile-time constant diag_logit -> no second masked reduction.
        @pl.when(j == pl.num_programs(1) - 1)
        def _():
            lse = m_scr[...] + jnp.log(l_scr[...])
            o_ref[...] = lse - diag_logit

    return kernel


def infonce_loss(query, *, temperature=TEMPERATURE, matmul_dtype=jnp.float32):
    """InfoNCE loss (reduction='mean') for a (N, D) batch of embeddings.

    matmul_dtype=jnp.bfloat16 is the recommended setting for large N on
    v5e/v6e/v7x (native bf16 MXU); elementwise math always stays in f32.
    """
    n, d = query.shape

    # Lane-dense feature dim: zero-pad D to a multiple of 128 (exact).
    d_pad = pl.cdiv(d, 128) * 128
    if d_pad != d:
        query = jnp.pad(query, ((0, 0), (0, d_pad - d)))

    # (128, 128) logits tiles for large N (well within v7x's 64 MiB VMEM with
    # double-buffered inputs); full extent for small N.
    tm = 128 if n % 128 == 0 else n
    tn = 128 if n % 128 == 0 else n
    grid = (n // tm, n // tn)

    kernel = _make_infonce_kernel(temperature, matmul_dtype)

    per_row = pl.pallas_call(
        kernel,
        out_shape=jax.ShapeDtypeStruct((n, 1), jnp.float32),
        grid_spec=pltpu.PrefetchScalarGridSpec(
            num_scalar_prefetch=0,
            grid=grid,
            in_specs=[
                pl.BlockSpec((tm, d_pad), lambda i, j: (i, 0)),   # query rows
                pl.BlockSpec((tn, d_pad), lambda i, j: (j, 0)),   # key rows
            ],
            out_specs=pl.BlockSpec((tm, 1), lambda i, j: (i, 0)),
            scratch_shapes=[
                pltpu.VMEM((tm, 1), jnp.float32),   # running max  m
                pltpu.VMEM((tm, 1), jnp.float32),   # running denom l
            ],
        ),
        compiler_params=pltpu.CompilerParams(
            # row tiles independent -> "parallel" (both v7x TensorCores);
            # col tiles are the online-softmax reduction -> "arbitrary", last.
            dimension_semantics=("parallel", "arbitrary"),
        ),
    )(query, query)

    return jnp.mean(per_row)


def _infonce_ref(query, temperature=TEMPERATURE):
    q = query.astype(jnp.float32)
    qn = q / jnp.maximum(jnp.linalg.norm(q, axis=-1, keepdims=True), EPS)
    sim = qn @ qn.T
    n = q.shape[0]
    sim = jnp.where(jnp.eye(n, dtype=bool), MASK_FILL, sim)
    logits = sim / temperature
    lse = jax.scipy.special.logsumexp(logits, axis=-1)
    return jnp.mean(lse - jnp.diag(logits))


if __name__ == "__main__":
    key = jax.random.PRNGKey(0)

    # Small shape consistent with the module: batch of 8 embeddings, dim 32.
    n, d = 8, 32
    query = jax.random.normal(key, (n, d), dtype=jnp.float32)
    loss = infonce_loss(query)
    jax.block_until_ready(loss)
    ref = _infonce_ref(query)
    assert jnp.allclose(loss, ref, rtol=1e-5), (loss, ref)

    # Also exercise the tiled multi-grid-point (online-logsumexp) path.
    n2, d2 = 256, 96
    query2 = jax.random.normal(jax.random.PRNGKey(1), (n2, d2), dtype=jnp.float32)
    loss2 = infonce_loss(query2)
    jax.block_until_ready(loss2)
    ref2 = _infonce_ref(query2)
    assert jnp.allclose(loss2, ref2, rtol=1e-5), (loss2, ref2)

    print("KERNEL_OK")
</pallas_src>

<mosaic_0001>
module attributes {stable_mosaic.version = 11 : i64} {
  func.func @kernel(%arg0: i32, %arg1: i32, %arg2: memref<8x128xf32, #tpu.memory_space<vmem>>, %arg3: memref<8x128xf32, #tpu.memory_space<vmem>>, %arg4: memref<8x1xf32, #tpu.memory_space<vmem>>, %arg5: memref<8x1xf32, #tpu.memory_space<vmem>>, %arg6: memref<8x1xf32, #tpu.memory_space<vmem>>) attributes {dimension_semantics = [#tpu.dimension_semantics<parallel>, #tpu.dimension_semantics<arbitrary>], iteration_bounds = array<i64: 1, 1>, scalar_prefetch = 0 : i64, scratch_operands = 2 : i64, tpu.core_type = #tpu.core_type<tc>, window_params = [{transform_indices = @transform_0, window_bounds = array<i64: 8, 128>}, {transform_indices = @transform_1, window_bounds = array<i64: 8, 128>}, {transform_indices = @transform_2, window_bounds = array<i64: 8, 1>}]} {
    %c0_i32 = arith.constant 0 : i32
    %0 = arith.cmpi eq, %arg1, %c0_i32 : i32
    %1 = arith.extui %0 : i1 to i32
    %c0_i32_0 = arith.constant 0 : i32
    %2 = arith.cmpi ne, %1, %c0_i32_0 : i32
    scf.if %2 {
      %cst_24 = arith.constant 0xFF800000 : f32
      %56 = vector.broadcast %cst_24 : f32 to vector<8x1xf32>
      %c0_25 = arith.constant 0 : index
      %c0_26 = arith.constant 0 : index
      %57 = vector.load %arg5[%c0_25, %c0_26] : memref<8x1xf32, #tpu.memory_space<vmem>>, vector<8x1xf32>
      tpu.vector_store %arg5[%c0_25, %c0_26], %56 {strides = array<i32>} : memref<8x1xf32, #tpu.memory_space<vmem>>, vector<8x1xf32>,
      %cst_27 = arith.constant 0.000000e+00 : f32
      %58 = vector.broadcast %cst_27 : f32 to vector<8x1xf32>
      %c0_28 = arith.constant 0 : index
      %c0_29 = arith.constant 0 : index
      %59 = vector.load %arg6[%c0_28, %c0_29] : memref<8x1xf32, #tpu.memory_space<vmem>>, vector<8x1xf32>
      tpu.vector_store %arg6[%c0_28, %c0_29], %58 {strides = array<i32>} : memref<8x1xf32, #tpu.memory_space<vmem>>, vector<8x1xf32>,
    } else {
    }
    %c0 = arith.constant 0 : index
    %c0_1 = arith.constant 0 : index
    %3 = vector.load %arg2[%c0, %c0_1] : memref<8x128xf32, #tpu.memory_space<vmem>>, vector<8x128xf32>
    %c0_2 = arith.constant 0 : index
    %c0_3 = arith.constant 0 : index
    %4 = vector.load %arg3[%c0_2, %c0_3] : memref<8x128xf32, #tpu.memory_space<vmem>>, vector<8x128xf32>
    %5 = arith.mulf %3, %3 : vector<8x128xf32>
    %cst = arith.constant dense<0.000000e+00> : vector<8xf32>
    %6 = vector.multi_reduction <add>, %5, %cst [1] : vector<8x128xf32> to vector<8xf32>
    %7 = vector.shape_cast %6 : vector<8xf32> to vector<8x1xf32>
    %cst_4 = arith.constant 1.000000e-24 : f32
    %8 = vector.broadcast %cst_4 : f32 to vector<8x1xf32>
    %9 = arith.maximumf %7, %8 : vector<8x1xf32>
    %10 = math.rsqrt %9 : vector<8x1xf32>
    %cst_5 = arith.constant 3.1622777 : f32
    %11 = vector.broadcast %cst_5 : f32 to vector<8x1xf32>
    %12 = arith.mulf %10, %11 : vector<8x1xf32>
    %13 = arith.mulf %4, %4 : vector<8x128xf32>
    %cst_6 = arith.constant dense<0.000000e+00> : vector<8xf32>
    %14 = vector.multi_reduction <add>, %13, %cst_6 [1] : vector<8x128xf32> to vector<8xf32>
    %15 = vector.shape_cast %14 : vector<8xf32> to vector<8x1xf32>
    %cst_7 = arith.constant 1.000000e-24 : f32
    %16 = vector.broadcast %cst_7 : f32 to vector<8x1xf32>
    %17 = arith.maximumf %15, %16 : vector<8x1xf32>
    %18 = math.rsqrt %17 : vector<8x1xf32>
    %cst_8 = arith.constant 3.1622777 : f32
    %19 = vector.broadcast %cst_8 : f32 to vector<8x1xf32>
    %20 = arith.mulf %18, %19 : vector<8x1xf32>
    %21 = vector.broadcast %12 : vector<8x1xf32> to vector<8x128xf32>
    %22 = arith.mulf %3, %21 : vector<8x128xf32>
    %23 = vector.broadcast %20 : vector<8x1xf32> to vector<8x128xf32>
    %24 = arith.mulf %4, %23 : vector<8x128xf32>
    %cst_9 = arith.constant dense<0.000000e+00> : vector<8x8xf32>
    %25 = tpu.matmul %22, %24, %cst_9 {dimension_numbers = #tpu.dot_dimension_numbers<[1], [1], [0], [0], [0, 0, 1, 0], [], []>} : vector<8x128xf32>, vector<8x128xf32>, vector<8x8xf32> -> vector<8x8xf32>
    %c8_i32 = arith.constant 8 : i32
    %26 = arith.muli %arg0, %c8_i32 : i32
    %27 = tpu.iota {dimensions = array<i32: 0>} : vector<8x8xi32>
    %28 = vector.broadcast %26 : i32 to vector<8x8xi32>
    %29 = arith.addi %28, %27 : vector<8x8xi32>
    %c8_i32_10 = arith.constant 8 : i32
    %30 = arith.muli %arg1, %c8_i32_10 : i32
    %31 = tpu.iota {dimensions = array<i32: 1>} : vector<8x8xi32>
    %32 = vector.broadcast %30 : i32 to vector<8x8xi32>
    %33 = arith.addi %32, %31 : vector<8x8xi32>
    %34 = arith.cmpi eq, %29, %33 : vector<8x8xi32>
    %cst_11 = arith.constant -1.000000e+10 : f32
    %35 = vector.broadcast %cst_11 : f32 to vector<8x8xf32>
    %36 = arith.select %34, %35, %25 : vector<8x8xi1>, vector<8x8xf32>
    %c0_12 = arith.constant 0 : index
    %c0_13 = arith.constant 0 : index
    %37 = vector.load %arg5[%c0_12, %c0_13] : memref<8x1xf32, #tpu.memory_space<vmem>>, vector<8x1xf32>
    %cst_14 = arith.constant dense<0xFF800000> : vector<8xf32>
    %38 = vector.multi_reduction <maximumf>, %36, %cst_14 [1] : vector<8x8xf32> to vector<8xf32>
    %39 = vector.shape_cast %38 : vector<8xf32> to vector<8x1xf32>
    %40 = arith.maximumf %37, %39 : vector<8x1xf32>
    %41 = arith.subf %37, %40 : vector<8x1xf32>
    %42 = math.exp %41 : vector<8x1xf32>
    %c0_15 = arith.constant 0 : index
    %c0_16 = arith.constant 0 : index
    %43 = vector.load %arg6[%c0_15, %c0_16] : memref<8x1xf32, #tpu.memory_space<vmem>>, vector<8x1xf32>
    %44 = arith.mulf %42, %43 : vector<8x1xf32>
    %45 = vector.broadcast %40 : vector<8x1xf32> to vector<8x8xf32>
    %46 = arith.subf %36, %45 : vector<8x8xf32>
    %47 = math.exp %46 : vector<8x8xf32>
    %cst_17 = arith.constant dense<0.000000e+00> : vector<8xf32>
    %48 = vector.multi_reduction <add>, %47, %cst_17 [1] : vector<8x8xf32> to vector<8xf32>
    %49 = vector.shape_cast %48 : vector<8xf32> to vector<8x1xf32>
    %50 = arith.addf %44, %49 : vector<8x1xf32>
    %c0_18 = arith.constant 0 : index
    %c0_19 = arith.constant 0 : index
    %51 = vector.load %arg6[%c0_18, %c0_19] : memref<8x1xf32, #tpu.memory_space<vmem>>, vector<8x1xf32>
    tpu.vector_store %arg6[%c0_18, %c0_19], %50 {strides = array<i32>} : memref<8x1xf32, #tpu.memory_space<vmem>>, vector<8x1xf32>,
    %c0_20 = arith.constant 0 : index
    %c0_21 = arith.constant 0 : index
    %52 = vector.load %arg5[%c0_20, %c0_21] : memref<8x1xf32, #tpu.memory_space<vmem>>, vector<8x1xf32>
    tpu.vector_store %arg5[%c0_20, %c0_21], %40 {strides = array<i32>} : memref<8x1xf32, #tpu.memory_space<vmem>>, vector<8x1xf32>,
    %c0_i32_22 = arith.constant 0 : i32
    %53 = arith.cmpi eq, %arg1, %c0_i32_22 : i32
    %54 = arith.extui %53 : i1 to i32
    %c0_i32_23 = arith.constant 0 : i32
    %55 = arith.cmpi ne, %54, %c0_i32_23 : i32
    scf.if %55 {
      %c0_24 = arith.constant 0 : index
      %c0_25 = arith.constant 0 : index
      %56 = vector.load %arg5[%c0_24, %c0_25] : memref<8x1xf32, #tpu.memory_space<vmem>>, vector<8x1xf32>
      %c0_26 = arith.constant 0 : index
      %c0_27 = arith.constant 0 : index
      %57 = vector.load %arg6[%c0_26, %c0_27] : memref<8x1xf32, #tpu.memory_space<vmem>>, vector<8x1xf32>
      %58 = math.log %57 : vector<8x1xf32>
      %59 = arith.addf %56, %58 : vector<8x1xf32>
      %cst_28 = arith.constant -1.000000e+10 : f32
      %60 = vector.broadcast %cst_28 : f32 to vector<8x1xf32>
      %61 = arith.subf %59, %60 : vector<8x1xf32>
      %c0_29 = arith.constant 0 : index
      %c0_30 = arith.constant 0 : index
      %62 = vector.load %arg4[%c0_29, %c0_30] : memref<8x1xf32, #tpu.memory_space<vmem>>, vector<8x1xf32>
      tpu.vector_store %arg4[%c0_29, %c0_30], %61 {strides = array<i32>} : memref<8x1xf32, #tpu.memory_space<vmem>>, vector<8x1xf32>,
    } else {
    }
    return
  }
  func.func @transform_0(%arg0: i32, %arg1: i32) -> (i32, i32) {
    %c0_i32 = arith.constant 0 : i32
    %c0_i32_0 = arith.constant 0 : i32
    return %arg0, %c0_i32 : i32, i32
  }
  func.func @transform_1(%arg0: i32, %arg1: i32) -> (i32, i32) {
    %c0_i32 = arith.constant 0 : i32
    %c0_i32_0 = arith.constant 0 : i32
    return %arg1, %c0_i32 : i32, i32
  }
  func.func @transform_2(%arg0: i32, %arg1: i32) -> (i32, i32) {
    %c0_i32 = arith.constant 0 : i32
    %c0_i32_0 = arith.constant 0 : i32
    return %arg0, %c0_i32 : i32, i32
  }
}

</mosaic_0001>

<bundles_post_ra>
// kernel: tpu_custom_call.1
= control target key start
LH: loop header
LB: loop body
LE: loop exit
PB: predicated region body
PF: predicated region fallthrough
CT: control target
= control target key end

     0   :  { %7 = vsyncpa [#allocation5], 0  ;;  %s311_s0 = inlined_call_operand.hbm [shape: f32[8,128], index: 0, kind: input, shape index: {}]   ;;  %s312_s1 = inlined_call_operand.hbm [shape: f32[8,128], index: 1, kind: input, shape index: {}]   ;;  %s313_s2 = inlined_call_operand.vmem [shape: f32[8,1], index: 2, kind: output, shape index: {}]  }
   0x1   :  { %8 = vsyncpa [#allocation7], 0  ;;  %s256_s9 = smov [#allocation4]   ;;  %s257_s11 = smov [#allocation6]  }
   0x2   :  { %s15_s10 = sshll.u32 %s256_s9, 4  ;;  %s25_s12 = sshll.u32 %s257_s11, 4  ;;  %s16_s10 = int_to_ptr.vmem [resolvable:$true] %s15_s10  ;;  %s26_s12 = int_to_ptr.vmem [resolvable:$true] %s25_s12 }
   0x3   :  { %s208_s15 = scalar_lea.hbm %s311_s0, 128 }
   0x4   :  { %p209_p0 = scmp.ne.s32.totalorder %s311_s0, %s208_s15  ;;  %p212_p1 = scmp.lt.u32.totalorder %s208_s15, %s311_s0 }
   0x6   :  { %p214_p2 = pnand %p212_p1, %p209_p0 }
   0x8   :  { %217 = shalt.err (!%p214_p2)
}
   0x9   :  { %s218_s20 = scalar_lea.vmem %s16_s10, 128  ;;  %p223_p4 = scmp.lt.s32.totalorder %s16_s10, %s16_s10 }
   0xa   :  { %p219_p3 = scmp.ne.s32.totalorder %s16_s10, %s218_s20  ;;  %p224_p5 = scmp.lt.s32.totalorder %s218_s20, %s218_s20 }
   0xc   :  { %p225_p6 = por %p224_p5, %p223_p4 }
   0xe   :  { %p226_p7 = pnand %p225_p6, %p219_p3 }
  0x10   :  { %229 = shalt.err (!%p226_p7)
}
  0x11   :  { %18 = dma.hbm_to_vmem [thread:$0]  %s311_s0, 128, %s16_s10, [#allocation5]  }
  0x12   :  { %s230_s25 = scalar_lea.hbm %s312_s1, 128 }
  0x13   :  { %p231_p8 = scmp.ne.s32.totalorder %s312_s1, %s230_s25  ;;  %p234_p9 = scmp.lt.u32.totalorder %s230_s25, %s312_s1 }
  0x15   :  { %p236_p10 = pnand %p234_p9, %p231_p8 }
  0x17   :  { %239 = shalt.err (!%p236_p10)
}
  0x18   :  { %s240_s30 = scalar_lea.vmem %s26_s12, 128  ;;  %p245_p12 = scmp.lt.s32.totalorder %s26_s12, %s26_s12 }
  0x19   :  { %p241_p11 = scmp.ne.s32.totalorder %s26_s12, %s240_s30  ;;  %p246_p13 = scmp.lt.s32.totalorder %s240_s30, %s240_s30 }
  0x1b   :  { %p247_p0 = por %p246_p13, %p245_p12 }
  0x1d   :  { %p248_p1 = pnand %p247_p0, %p241_p11 }
  0x1f   :  { %251 = shalt.err (!%p248_p1)
}
  0x20   :  { %28 = dma.hbm_to_vmem [thread:$0]  %s312_s1, 128, %s26_s12, [#allocation7]  }
  0x21   :  { %252 = dma.done.wait [#allocation5], 128  }
  0x22   :  { %253 = vsyncadd [#allocation5], 4294967168 }
  0x23   :  { %254 = dma.done.wait [#allocation7], 128  }
  0x24   :  { %255 = vsyncadd [#allocation7], 4294967168  ;;  %v43_v0 = vld [vmem:[#allocation6] sm:$0xff]  ;;  %v42_v1 = vld [vmem:[#allocation4] sm:$0xff]  ;;  %v258_v4 = vmov 0.0   ;;  %vm39_vm0 = vcmask 7168   ;;  %v129_v16 = vlaneseq }
  0x25   :  { %v50_v2 = vmul.f32 %v43_v0, %v43_v0  ;;  %v44_v3 = vmul.f32 %v42_v1, %v42_v1  ;;  %185 = vmatprep.subr.mxu0 %v258_v4  ;;  %41 = vst.msk [vmem:[#allocation3] sm:$0xff] %vm39_vm0, %v258_v4  ;;  %vm259_vm1 = vmmov 0   ;;  %v260_v15 = vmov -inf  }
  0x26   :  { %187 = vmatprep.mubr.msk.f32.mxu0 %vm259_vm1, %v258_v4  ;;  %40 = vst.msk [vmem:[#allocation2] sm:$0xff] %vm39_vm0, %v260_v15  ;;  %v130_v17 = vshrl.u32 %v129_v16, 7  ;;  %v135_v18 = vand.u32 127, %v129_v16  ;;  %vm141_vm3 = vcmask 64512   ;;  %v261_v23 = vmov 0  }
  0x27   :  { %51 = vadd.xlane.f32.xlu0 %v50_v2  ;;  %196 = vset.pattern.permute.xlu1 %v261_v23 }
  0x28   :  { %vm138_vm2 = vcmp.eq.s32.totalorder %v130_v17, %v135_v18  ;;  %197 = vset.pattern.permute.xlu0 %v261_v23 }
  0x2b   :  { %45 = vadd.xlane.f32.xlu0 %v44_v3 }
  0x2c   :  { %v149_v35 = vld [vmem:[#allocation3] sm:$0xff] }
  0x2d   :  { %v140_v24 = vld [vmem:[#allocation2] sm:$0xff] }
  0xb4   :  { %v52_v5 = vpop.xlane.xlu0 %51 }
  0xb5   :  { %v53_v6 = vmax.f32 %v52_v5, 1e-24 }
  0xb7   :  { %198 = vrsqrt.f32 %v53_v6 }
  0xb8   :  { %v46_v7 = vpop.xlane.xlu0 %45 }
  0xb9   :  { %v47_v8 = vmax.f32 %v46_v7, 1e-24 }
  0xbb   :  { %200 = vrsqrt.f32 %v47_v8 }
  0xc1   :  { %v199_v9 = vpop.eup %198 }
  0xc2   :  { %v55_v10 = vmul.f32 3.1622777, %v199_v9 }
  0xc4   :  { %v57_v11 = vmul.f32 %v55_v10, %v43_v0 }
  0xc5   :  { %v201_v12 = vpop.eup %200 }
  0xc6   :  { %v49_v13 = vmul.f32 3.1622777, %v201_v12  ;;  %186 = vmatpush3.xpose.msra.mxu0 %v57_v11 }
  0xc8   :  { %v56_v14 = vmul.f32 %v49_v13, %v42_v1 }
  0xca   :  { %188 = vmatmul.mubr.f32.vlgmr.msra.gmra.mrb[0].mxu0 %v56_v14 }
 0x19d   :  { %v124_v19 = vpop.f32.mrb[0].mxu0 }
 0x19e   :  { %v139_v20 = vsel %vm138_vm2, -1e+10, %v124_v19  ;;  %v189_v21 = vpop.f32.mrb[1].mxu0 }
 0x19f   :  { %v142_v22 = vsel %vm141_vm3, %v139_v20, -inf }
 0x1a0   :  { %143 = vmax.xlane.f32.xlu1 %v142_v22 }
 0x22d   :  { %v144_v25 = vpop.xlane.xlu1 %143 }
 0x22e   :  { %v145_v26 = vmax.f32 %v140_v24, %v144_v25 }
 0x230   :  { %v146_v27 = vsub.f32 %v140_v24, %v145_v26  ;;  %165 = vst.msk [vmem:[#allocation2] sm:$0xff] %vm39_vm0, %v145_v26  ;;  %153 = vperm.xlu1 %196, %v145_v26  }
 0x232   :  { %v147_v33 = vmul.f32 1.442695, %v146_v27 }
 0x237   :  { %v169_v42 = vld [vmem:[#allocation2] sm:$0xff] }
 0x2af   :  { %v154_v28 = vpop.permute.xlu1 %153 }
 0x2b0   :  { %v156_v29 = vsub.f32 %v139_v20, %v154_v28 }
 0x2b2   :  { %v157_v30 = vmul.f32 1.442695, %v156_v29 }
 0x2b4   :  { %202 = vpow2.f32 %v157_v30 }
 0x2b5   :  { %204 = vpow2.f32 %v147_v33 }
 0x2be   :  { %v203_v31 = vpop.eup %202 }
 0x2bf   :  { %v159_v32 = vsel %vm141_vm3, %v203_v31, 0.0  ;;  %v205_v34 = vpop.eup %204 }
 0x2c0   :  { %160 = vadd.xlane.f32.xlu0 %v159_v32  ;;  %v150_v36 = vmul.f32 %v205_v34, %v149_v35 }
 0x34d   :  { %v161_v37 = vpop.xlane.xlu0 %160 }
 0x34e   :  { %v162_v38 = vadd.f32 %v161_v37, %v150_v36 }
 0x350   :  { %164 = vst.msk [vmem:[#allocation3] sm:$0xff] %vm39_vm0, %v162_v38 }
 0x357   :  { %v170_v39 = vld [vmem:[#allocation3] sm:$0xff] }
 0x358   :  { %206 = vlog2.f32 %v170_v39 }
 0x362   :  { %v207_v40 = vpop.eup %206 }
 0x363   :  { %v172_v41 = vmul.f32 0.6931472, %v207_v40 }
 0x365   :  { %v173_v43 = vadd.f32 %v172_v41, %v169_v42 }
 0x367   :  { %v182_v44 = vadd.f32 1e+10, %v173_v43 }
 0x369   :  { %175 = vst.msk [vmem:[%s313_s2] sm:$0xff] %vm39_vm0, %v182_v44 }
 0x36a   :  { %180 = vsyncpa [#allocation5], 1 }
 0x36b   :  { %181 = vsyncpa [#allocation7], 1 }

</bundles_post_ra>
